<compile_context>
chip_gen: v7x
topology: tpu7x:2x2x1
jax: 0.10.0
libtpu: 0.0.40
codegen_flags: <defaults>
</compile_context>

<pallas_src>
import functools
import math

import jax
import jax.numpy as jnp
from jax.experimental import pallas as pl
from jax.experimental.pallas import tpu as pltpu

# ---- model hyper-parameters (small, consistent with the module) -------------
D_MODEL = 32
N_HEAD = 4
D_FF = 64
EPS = 1e-6  # LayerNormalization eps


# ---- fused encoder-block kernel ---------------------------------------------
def encoder_block_kernel(x_ref, wqkvo_ref, w1_ref, w2_ref, vec_ref, b1_ref,
                         o_ref, *, mxu_dtype):
    bt, S, D = x_ref.shape          # (batch_tile, seq, d_model)
    N = bt * S
    dk = D // N_HEAD

    # flatten rows: (bt, S, D) -> (N, D)  (layout-compatible merge of leading dims)
    x = x_ref[...].reshape(N, D)

    ln1_a = vec_ref[0:1, :]
    ln1_b = vec_ref[1:2, :]
    ln2_a = vec_ref[2:3, :]
    ln2_b = vec_ref[3:4, :]
    b2 = vec_ref[4:5, :]

    def layer_norm(v, alpha, bias):
        mean = jnp.mean(v, axis=-1, keepdims=True)
        # torch.std default is unbiased (Bessel's correction: divide by N-1)
        var = jnp.sum((v - mean) ** 2, axis=-1, keepdims=True) * (1.0 / (D - 1))
        inv_std = pl.reciprocal(jnp.sqrt(var) + EPS)   # exact; runs on EUP slot
        return alpha * (v - mean) * inv_std + bias

    # ---- residual connection 0:  x + SelfAttention(LayerNorm(x)) ------------
    xn = layer_norm(x, ln1_a, ln1_b)
    # fused Q|K|V'W_O projection; attention scale folded into the Q columns,
    # W_O folded into the per-head V columns (all at pack time).
    qkvo = jnp.dot(xn.astype(mxu_dtype), wqkvo_ref[...],
                   preferred_element_type=jnp.float32)         # (N, 2D + H*D)
    q = qkvo[:, 0:D].reshape(bt, S, D)
    k = qkvo[:, D:2 * D].reshape(bt, S, D)
    vo = qkvo[:, 2 * D:].reshape(bt, S, N_HEAD * D)            # per-head V already through W_O

    # hoisted K transpose: one relayout instead of one per head per dot
    kT = jnp.swapaxes(k, 1, 2)                                 # (bt, D, S)

    attn = None
    for h in range(N_HEAD):                        # static, unrolled head loop
        qh = q[:, :, h * dk:(h + 1) * dk]                      # (bt, S, dk)
        kTh = kT[:, h * dk:(h + 1) * dk, :]                    # (bt, dk, S)
        s = jnp.einsum('bqd,bdk->bqk',
                       qh.astype(mxu_dtype), kTh.astype(mxu_dtype),
                       preferred_element_type=jnp.float32)     # (bt, S, S)
        # enc_mask intentionally ignored: reference `masked_fill` result is discarded.
        s = s - jnp.max(s, axis=-1, keepdims=True)
        e = jnp.exp(s)
        p = e * pl.reciprocal(jnp.sum(e, axis=-1, keepdims=True))  # exact
        # dropout == identity (eval mode)
        voh = vo[:, :, h * D:(h + 1) * D]                      # (bt, S, D)
        ctx = jnp.einsum('bqk,bkd->bqd',
                         p.astype(mxu_dtype), voh.astype(mxu_dtype),
                         preferred_element_type=jnp.float32)   # (bt, S, D)
        attn = ctx if attn is None else attn + ctx
    x1 = x + attn.reshape(N, D)

    # ---- residual connection 1:  x1 + FFN(LayerNorm(x1)) --------------------
    x1n = layer_norm(x1, ln2_a, ln2_b)
    h1 = jnp.dot(x1n.astype(mxu_dtype), w1_ref[...],
                 preferred_element_type=jnp.float32) + b1_ref[...]
    h1 = jnp.maximum(h1, 0.0)                     # ReLU
    ff = jnp.dot(h1.astype(mxu_dtype), w2_ref[...],
                 preferred_element_type=jnp.float32) + b2
    o_ref[...] = (x1 + ff).reshape(bt, S, D).astype(o_ref.dtype)


# ---- one-time parameter packing (weight preprocessing, outside the kernel) ---
def _pack_params(params, mxu_dtype=jnp.float32):
    """Pack once and reuse; weights are pre-cast to mxu_dtype so the kernel
    never re-casts constant weights per invocation."""
    wq, wk, wv, wo, ln1_a, ln1_b, w1, b1, w2, b2, ln2_a, ln2_b = params
    D = wq.shape[0]
    d_k = D // N_HEAD
    scale = 1.0 / math.sqrt(d_k)
    # Fold W_O into W_V per head:  (P_h V_h) W_O[h,:] = P_h (X_n (W_V[:,h] W_O[h,:]))
    wvo = jnp.concatenate(
        [wv[:, h * d_k:(h + 1) * d_k] @ wo[h * d_k:(h + 1) * d_k, :]
         for h in range(N_HEAD)], axis=1)                         # (D, H*D)
    # Fold attention scale into Q; fuse everything into one (D, 2D + H*D) matmul.
    wqkvo = jnp.concatenate([wq * scale, wk, wvo], axis=1).astype(mxu_dtype)
    # stack all (1, D)-shaped vectors into a single array (kept f32: added post-acc)
    vecs = jnp.concatenate([ln1_a, ln1_b, ln2_a, ln2_b, b2], axis=0)  # (5, D)
    return wqkvo, w1.astype(mxu_dtype), w2.astype(mxu_dtype), vecs, b1


# ---- wrapper ------------------------------------------------------------------
def encoder_block(x, params, enc_mask=None, *, batch_tile=None,
                  mxu_dtype=jnp.float32):
    """x: (B, S, D) float32.

    enc_mask is ignored (faithful to the reference, where masked_fill's result
    is discarded).  batch_tile=None -> whole batch in a single grid step
    (recommended at small B*S on every generation); set batch_tile < B only
    when per-tile work is large enough to amortize per-step overhead (v7x
    2-TC sharding).  mxu_dtype=jnp.bfloat16 enables bf16 MXU operands on
    v6e/v7x (weights pre-cast at pack time); keep f32 on v5e / for 1e-4 checks.
    """
    del enc_mask
    B, S, D = x.shape
    if batch_tile is None:
        batch_tile = B                         # collapsed grid: one step
    assert B % batch_tile == 0

    wqkvo, w1, w2, vecs, b1 = _pack_params(params, mxu_dtype)

    kernel = functools.partial(encoder_block_kernel, mxu_dtype=mxu_dtype)
    grid = (B // batch_tile,)

    in_specs = [
        pl.BlockSpec((batch_tile, S, D), lambda b: (b, 0, 0)),
        pl.BlockSpec(wqkvo.shape, lambda b: (0, 0)),
        pl.BlockSpec(w1.shape, lambda b: (0, 0)),
        pl.BlockSpec(w2.shape, lambda b: (0, 0)),
        pl.BlockSpec(vecs.shape, lambda b: (0, 0)),
        pl.BlockSpec(b1.shape, lambda b: (0, 0)),
    ]

    return pl.pallas_call(
        kernel,
        out_shape=jax.ShapeDtypeStruct((B, S, D), x.dtype),
        grid=grid,
        in_specs=in_specs,
        out_specs=pl.BlockSpec((batch_tile, S, D), lambda b: (b, 0, 0)),
        compiler_params=pltpu.CompilerParams(dimension_semantics=("parallel",)),
    )(x, wqkvo, w1, w2, vecs, b1)


# ---- pure-JAX reference (for correctness check) --------------------------------
def encoder_block_ref(x, params):
    (wq, wk, wv, wo, ln1_a, ln1_b, w1, b1, w2, b2, ln2_a, ln2_b) = params
    B, S, D = x.shape
    d_k = D // N_HEAD

    def layer_norm(v, a, b):
        mean = jnp.mean(v, axis=-1, keepdims=True)
        var = jnp.sum((v - mean) ** 2, axis=-1, keepdims=True) / (D - 1)
        return a * (v - mean) / (jnp.sqrt(var) + EPS) + b

    xn = layer_norm(x, ln1_a, ln1_b)
    q = xn @ wq
    k = xn @ wk
    v = xn @ wv
    q = q.reshape(B, S, N_HEAD, d_k).transpose(0, 2, 1, 3)
    k = k.reshape(B, S, N_HEAD, d_k).transpose(0, 2, 1, 3)
    v = v.reshape(B, S, N_HEAD, d_k).transpose(0, 2, 1, 3)
    scores = jnp.einsum("bhqd,bhkd->bhqk", q, k) / math.sqrt(d_k)
    probs = jax.nn.softmax(scores, axis=-1)
    attn = jnp.einsum("bhqk,bhkd->bhqd", probs, v)
    attn = attn.transpose(0, 2, 1, 3).reshape(B, S, D) @ wo
    x1 = x + attn

    x1n = layer_norm(x1, ln2_a, ln2_b)
    ff = jnp.maximum(x1n @ w1 + b1, 0.0) @ w2 + b2
    return x1 + ff


# ---- parameter construction (deterministic, synthetic) -------------------------
def make_params(key):
    ks = jax.random.split(key, 6)
    scale = 0.05
    wq = scale * jax.random.normal(ks[0], (D_MODEL, D_MODEL), jnp.float32)  # (in, out)
    wk = scale * jax.random.normal(ks[1], (D_MODEL, D_MODEL), jnp.float32)
    wv = scale * jax.random.normal(ks[2], (D_MODEL, D_MODEL), jnp.float32)
    wo = scale * jax.random.normal(ks[3], (D_MODEL, D_MODEL), jnp.float32)
    ln1_a = jnp.ones((1, D_MODEL), jnp.float32)
    ln1_b = jnp.zeros((1, D_MODEL), jnp.float32)
    w1 = scale * jax.random.normal(ks[4], (D_MODEL, D_FF), jnp.float32)     # (in, out)
    b1 = jnp.zeros((1, D_FF), jnp.float32)
    w2 = scale * jax.random.normal(ks[5], (D_FF, D_MODEL), jnp.float32)     # (in, out)
    b2 = jnp.zeros((1, D_MODEL), jnp.float32)
    ln2_a = jnp.ones((1, D_MODEL), jnp.float32)
    ln2_b = jnp.zeros((1, D_MODEL), jnp.float32)
    return (wq, wk, wv, wo, ln1_a, ln1_b, w1, b1, w2, b2, ln2_a, ln2_b)


if __name__ == "__main__":
    key = jax.random.PRNGKey(0)
    k_x, k_p = jax.random.split(key)

    B, S = 2, 8
    x = jax.random.normal(k_x, (B, S, D_MODEL), jnp.float32)
    params = make_params(k_p)
    # enc_mask exists in the PyTorch API but has no effect on the output
    # (masked_fill result is discarded there); pass None.
    enc_mask = None

    ref = encoder_block_ref(x, params)

    # default path: single grid step, f32 MXU operands (recommended at this size)
    out = encoder_block(x, params, enc_mask)
    out = jax.block_until_ready(out)
    assert out.shape == (B, S, D_MODEL)
    assert jnp.allclose(out, ref, atol=1e-4, rtol=1e-4), "mismatch vs reference"

    # optional batch-sharded path (only pays off at much larger B*S on v7x);
    # exercised here purely as a correctness check of the gridded BlockSpecs.
    out2 = encoder_block(x, params, enc_mask, batch_tile=1)
    out2 = jax.block_until_ready(out2)
    assert jnp.allclose(out2, ref, atol=1e-4, rtol=1e-4), "mismatch (batch_tile=1)"

    print("KERNEL_OK")
</pallas_src>

<mosaic_0001>
module attributes {stable_mosaic.version = 11 : i64} {
  func.func @encoder_block_kernel(%arg0: i32, %arg1: memref<2x8x32xf32, #tpu.memory_space<vmem>>, %arg2: memref<32x192xf32, #tpu.memory_space<vmem>>, %arg3: memref<32x64xf32, #tpu.memory_space<vmem>>, %arg4: memref<64x32xf32, #tpu.memory_space<vmem>>, %arg5: memref<5x32xf32, #tpu.memory_space<vmem>>, %arg6: memref<1x64xf32, #tpu.memory_space<vmem>>, %arg7: memref<2x8x32xf32, #tpu.memory_space<vmem>>) attributes {dimension_semantics = [#tpu.dimension_semantics<parallel>], iteration_bounds = array<i64: 1>, scalar_prefetch = 0 : i64, scratch_operands = 0 : i64, tpu.core_type = #tpu.core_type<tc>, window_params = [{transform_indices = @transform_0, window_bounds = array<i64: 2, 8, 32>}, {pipeline_mode = #tpu.pipeline_mode<synchronous>, transform_indices = @transform_1, window_bounds = array<i64: 32, 192>}, {pipeline_mode = #tpu.pipeline_mode<synchronous>, transform_indices = @transform_2, window_bounds = array<i64: 32, 64>}, {pipeline_mode = #tpu.pipeline_mode<synchronous>, transform_indices = @transform_3, window_bounds = array<i64: 64, 32>}, {pipeline_mode = #tpu.pipeline_mode<synchronous>, transform_indices = @transform_4, window_bounds = array<i64: 5, 32>}, {pipeline_mode = #tpu.pipeline_mode<synchronous>, transform_indices = @transform_5, window_bounds = array<i64: 1, 64>}, {transform_indices = @transform_6, window_bounds = array<i64: 2, 8, 32>}]} {
    %c0 = arith.constant 0 : index
    %c0_0 = arith.constant 0 : index
    %c0_1 = arith.constant 0 : index
    %0 = vector.load %arg1[%c0, %c0_0, %c0_1] : memref<2x8x32xf32, #tpu.memory_space<vmem>>, vector<2x8x32xf32>
    %1 = vector.shape_cast %0 : vector<2x8x32xf32> to vector<16x32xf32>
    %c0_2 = arith.constant 0 : index
    %c0_3 = arith.constant 0 : index
    %2 = vector.load %arg5[%c0_2, %c0_3] : memref<5x32xf32, #tpu.memory_space<vmem>>, vector<1x32xf32>
    %c1 = arith.constant 1 : index
    %c0_4 = arith.constant 0 : index
    %3 = vector.load %arg5[%c1, %c0_4] : memref<5x32xf32, #tpu.memory_space<vmem>>, vector<1x32xf32>
    %c2 = arith.constant 2 : index
    %c0_5 = arith.constant 0 : index
    %4 = vector.load %arg5[%c2, %c0_5] : memref<5x32xf32, #tpu.memory_space<vmem>>, vector<1x32xf32>
    %c3 = arith.constant 3 : index
    %c0_6 = arith.constant 0 : index
    %5 = vector.load %arg5[%c3, %c0_6] : memref<5x32xf32, #tpu.memory_space<vmem>>, vector<1x32xf32>
    %c4 = arith.constant 4 : index
    %c0_7 = arith.constant 0 : index
    %6 = vector.load %arg5[%c4, %c0_7] : memref<5x32xf32, #tpu.memory_space<vmem>>, vector<1x32xf32>
    %cst = arith.constant dense<0.000000e+00> : vector<16xf32>
    %7 = vector.multi_reduction <add>, %1, %cst [1] : vector<16x32xf32> to vector<16xf32>
    %8 = vector.shape_cast %7 : vector<16xf32> to vector<16x1xf32>
    %cst_8 = arith.constant 3.200000e+01 : f32
    %9 = vector.broadcast %cst_8 : f32 to vector<16x1xf32>
    %10 = arith.divf %8, %9 : vector<16x1xf32>
    %11 = vector.broadcast %10 : vector<16x1xf32> to vector<16x32xf32>
    %12 = arith.subf %1, %11 : vector<16x32xf32>
    %13 = arith.mulf %12, %12 : vector<16x32xf32>
    %cst_9 = arith.constant dense<0.000000e+00> : vector<16xf32>
    %14 = vector.multi_reduction <add>, %13, %cst_9 [1] : vector<16x32xf32> to vector<16xf32>
    %15 = vector.shape_cast %14 : vector<16xf32> to vector<16x1xf32>
    %cst_10 = arith.constant 0.0322580636 : f32
    %16 = vector.broadcast %cst_10 : f32 to vector<16x1xf32>
    %17 = arith.mulf %15, %16 : vector<16x1xf32>
    %18 = math.sqrt %17 : vector<16x1xf32>
    %cst_11 = arith.constant 9.99999997E-7 : f32
    %19 = vector.broadcast %cst_11 : f32 to vector<16x1xf32>
    %20 = arith.addf %18, %19 : vector<16x1xf32>
    %21 = tpu.reciprocal %20 : vector<16x1xf32> -> vector<16x1xf32>
    %22 = vector.broadcast %10 : vector<16x1xf32> to vector<16x32xf32>
    %23 = arith.subf %1, %22 : vector<16x32xf32>
    %24 = vector.broadcast %2 : vector<1x32xf32> to vector<16x32xf32>
    %25 = arith.mulf %24, %23 : vector<16x32xf32>
    %26 = vector.broadcast %21 : vector<16x1xf32> to vector<16x32xf32>
    %27 = arith.mulf %25, %26 : vector<16x32xf32>
    %28 = vector.broadcast %3 : vector<1x32xf32> to vector<16x32xf32>
    %29 = arith.addf %27, %28 : vector<16x32xf32>
    %c0_12 = arith.constant 0 : index
    %c0_13 = arith.constant 0 : index
    %30 = vector.load %arg2[%c0_12, %c0_13] : memref<32x192xf32, #tpu.memory_space<vmem>>, vector<32x192xf32>
    %cst_14 = arith.constant dense<0.000000e+00> : vector<16x192xf32>
    %31 = tpu.matmul %29, %30, %cst_14 {dimension_numbers = #tpu.dot_dimension_numbers<[1], [0], [0], [1], [0, 0, 1, 1], [], []>} : vector<16x32xf32>, vector<32x192xf32>, vector<16x192xf32> -> vector<16x192xf32>
    %32 = vector.extract_strided_slice %31 {offsets = [0, 0], sizes = [16, 32], strides = [1, 1]} : vector<16x192xf32> to vector<16x32xf32>
    %33 = vector.shape_cast %32 : vector<16x32xf32> to vector<2x8x32xf32>
    %34 = vector.extract_strided_slice %31 {offsets = [0, 32], sizes = [16, 32], strides = [1, 1]} : vector<16x192xf32> to vector<16x32xf32>
    %35 = vector.shape_cast %34 : vector<16x32xf32> to vector<2x8x32xf32>
    %36 = vector.extract_strided_slice %31 {offsets = [0, 64], sizes = [16, 128], strides = [1, 1]} : vector<16x192xf32> to vector<16x128xf32>
    %37 = vector.shape_cast %36 : vector<16x128xf32> to vector<2x8x128xf32>
    %38 = tpu.transpose %35, [0, 2, 1] : vector<2x8x32xf32> -> vector<2x32x8xf32>
    %39 = vector.extract_strided_slice %33 {offsets = [0, 0, 0], sizes = [2, 8, 8], strides = [1, 1, 1]} : vector<2x8x32xf32> to vector<2x8x8xf32>
    %40 = vector.extract_strided_slice %38 {offsets = [0, 0, 0], sizes = [2, 8, 8], strides = [1, 1, 1]} : vector<2x32x8xf32> to vector<2x8x8xf32>
    "tpu.trace_start"() <{level = 10 : i32, message = "bqd,bdk->bqk"}> : () -> ()
    %cst_15 = arith.constant dense<0.000000e+00> : vector<2x8x8xf32>
    %41 = tpu.matmul %39, %40, %cst_15 {dimension_numbers = #tpu.dot_dimension_numbers<[2], [1], [1], [2], [0, 0, 0, 1, 1, 2], [0], [0]>} : vector<2x8x8xf32>, vector<2x8x8xf32>, vector<2x8x8xf32> -> vector<2x8x8xf32>
    "tpu.trace_stop"() : () -> ()
    %cst_16 = arith.constant dense<0xFF800000> : vector<2x8xf32>
    %42 = vector.multi_reduction <maximumf>, %41, %cst_16 [2] : vector<2x8x8xf32> to vector<2x8xf32>
    %43 = vector.shape_cast %42 : vector<2x8xf32> to vector<2x8x1xf32>
    %44 = vector.broadcast %43 : vector<2x8x1xf32> to vector<2x8x8xf32>
    %45 = arith.subf %41, %44 : vector<2x8x8xf32>
    %46 = math.exp %45 : vector<2x8x8xf32>
    %cst_17 = arith.constant dense<0.000000e+00> : vector<2x8xf32>
    %47 = vector.multi_reduction <add>, %46, %cst_17 [2] : vector<2x8x8xf32> to vector<2x8xf32>
    %48 = vector.shape_cast %47 : vector<2x8xf32> to vector<2x8x1xf32>
    %49 = tpu.reciprocal %48 : vector<2x8x1xf32> -> vector<2x8x1xf32>
    %50 = vector.broadcast %49 : vector<2x8x1xf32> to vector<2x8x8xf32>
    %51 = arith.mulf %46, %50 : vector<2x8x8xf32>
    %52 = vector.extract_strided_slice %37 {offsets = [0, 0, 0], sizes = [2, 8, 32], strides = [1, 1, 1]} : vector<2x8x128xf32> to vector<2x8x32xf32>
    "tpu.trace_start"() <{level = 10 : i32, message = "bqk,bkd->bqd"}> : () -> ()
    %cst_18 = arith.constant dense<0.000000e+00> : vector<2x8x32xf32>
    %53 = tpu.matmul %51, %52, %cst_18 {dimension_numbers = #tpu.dot_dimension_numbers<[2], [1], [1], [2], [0, 0, 0, 1, 1, 2], [0], [0]>} : vector<2x8x8xf32>, vector<2x8x32xf32>, vector<2x8x32xf32> -> vector<2x8x32xf32>
    "tpu.trace_stop"() : () -> ()
    %54 = vector.extract_strided_slice %33 {offsets = [0, 0, 8], sizes = [2, 8, 8], strides = [1, 1, 1]} : vector<2x8x32xf32> to vector<2x8x8xf32>
    %55 = vector.extract_strided_slice %38 {offsets = [0, 8, 0], sizes = [2, 8, 8], strides = [1, 1, 1]} : vector<2x32x8xf32> to vector<2x8x8xf32>
    "tpu.trace_start"() <{level = 10 : i32, message = "bqd,bdk->bqk"}> : () -> ()
    %cst_19 = arith.constant dense<0.000000e+00> : vector<2x8x8xf32>
    %56 = tpu.matmul %54, %55, %cst_19 {dimension_numbers = #tpu.dot_dimension_numbers<[2], [1], [1], [2], [0, 0, 0, 1, 1, 2], [0], [0]>} : vector<2x8x8xf32>, vector<2x8x8xf32>, vector<2x8x8xf32> -> vector<2x8x8xf32>
    "tpu.trace_stop"() : () -> ()
    %cst_20 = arith.constant dense<0xFF800000> : vector<2x8xf32>
    %57 = vector.multi_reduction <maximumf>, %56, %cst_20 [2] : vector<2x8x8xf32> to vector<2x8xf32>
    %58 = vector.shape_cast %57 : vector<2x8xf32> to vector<2x8x1xf32>
    %59 = vector.broadcast %58 : vector<2x8x1xf32> to vector<2x8x8xf32>
    %60 = arith.subf %56, %59 : vector<2x8x8xf32>
    %61 = math.exp %60 : vector<2x8x8xf32>
    %cst_21 = arith.constant dense<0.000000e+00> : vector<2x8xf32>
    %62 = vector.multi_reduction <add>, %61, %cst_21 [2] : vector<2x8x8xf32> to vector<2x8xf32>
    %63 = vector.shape_cast %62 : vector<2x8xf32> to vector<2x8x1xf32>
    %64 = tpu.reciprocal %63 : vector<2x8x1xf32> -> vector<2x8x1xf32>
    %65 = vector.broadcast %64 : vector<2x8x1xf32> to vector<2x8x8xf32>
    %66 = arith.mulf %61, %65 : vector<2x8x8xf32>
    %67 = vector.extract_strided_slice %37 {offsets = [0, 0, 32], sizes = [2, 8, 32], strides = [1, 1, 1]} : vector<2x8x128xf32> to vector<2x8x32xf32>
    "tpu.trace_start"() <{level = 10 : i32, message = "bqk,bkd->bqd"}> : () -> ()
    %cst_22 = arith.constant dense<0.000000e+00> : vector<2x8x32xf32>
    %68 = tpu.matmul %66, %67, %cst_22 {dimension_numbers = #tpu.dot_dimension_numbers<[2], [1], [1], [2], [0, 0, 0, 1, 1, 2], [0], [0]>} : vector<2x8x8xf32>, vector<2x8x32xf32>, vector<2x8x32xf32> -> vector<2x8x32xf32>
    "tpu.trace_stop"() : () -> ()
    %69 = arith.addf %53, %68 : vector<2x8x32xf32>
    %70 = vector.extract_strided_slice %33 {offsets = [0, 0, 16], sizes = [2, 8, 8], strides = [1, 1, 1]} : vector<2x8x32xf32> to vector<2x8x8xf32>
    %71 = vector.extract_strided_slice %38 {offsets = [0, 16, 0], sizes = [2, 8, 8], strides = [1, 1, 1]} : vector<2x32x8xf32> to vector<2x8x8xf32>
    "tpu.trace_start"() <{level = 10 : i32, message = "bqd,bdk->bqk"}> : () -> ()
    %cst_23 = arith.constant dense<0.000000e+00> : vector<2x8x8xf32>
    %72 = tpu.matmul %70, %71, %cst_23 {dimension_numbers = #tpu.dot_dimension_numbers<[2], [1], [1], [2], [0, 0, 0, 1, 1, 2], [0], [0]>} : vector<2x8x8xf32>, vector<2x8x8xf32>, vector<2x8x8xf32> -> vector<2x8x8xf32>
    "tpu.trace_stop"() : () -> ()
    %cst_24 = arith.constant dense<0xFF800000> : vector<2x8xf32>
    %73 = vector.multi_reduction <maximumf>, %72, %cst_24 [2] : vector<2x8x8xf32> to vector<2x8xf32>
    %74 = vector.shape_cast %73 : vector<2x8xf32> to vector<2x8x1xf32>
    %75 = vector.broadcast %74 : vector<2x8x1xf32> to vector<2x8x8xf32>
    %76 = arith.subf %72, %75 : vector<2x8x8xf32>
    %77 = math.exp %76 : vector<2x8x8xf32>
    %cst_25 = arith.constant dense<0.000000e+00> : vector<2x8xf32>
    %78 = vector.multi_reduction <add>, %77, %cst_25 [2] : vector<2x8x8xf32> to vector<2x8xf32>
    %79 = vector.shape_cast %78 : vector<2x8xf32> to vector<2x8x1xf32>
    %80 = tpu.reciprocal %79 : vector<2x8x1xf32> -> vector<2x8x1xf32>
    %81 = vector.broadcast %80 : vector<2x8x1xf32> to vector<2x8x8xf32>
    %82 = arith.mulf %77, %81 : vector<2x8x8xf32>
    %83 = vector.extract_strided_slice %37 {offsets = [0, 0, 64], sizes = [2, 8, 32], strides = [1, 1, 1]} : vector<2x8x128xf32> to vector<2x8x32xf32>
    "tpu.trace_start"() <{level = 10 : i32, message = "bqk,bkd->bqd"}> : () -> ()
    %cst_26 = arith.constant dense<0.000000e+00> : vector<2x8x32xf32>
    %84 = tpu.matmul %82, %83, %cst_26 {dimension_numbers = #tpu.dot_dimension_numbers<[2], [1], [1], [2], [0, 0, 0, 1, 1, 2], [0], [0]>} : vector<2x8x8xf32>, vector<2x8x32xf32>, vector<2x8x32xf32> -> vector<2x8x32xf32>
    "tpu.trace_stop"() : () -> ()
    %85 = arith.addf %69, %84 : vector<2x8x32xf32>
    %86 = vector.extract_strided_slice %33 {offsets = [0, 0, 24], sizes = [2, 8, 8], strides = [1, 1, 1]} : vector<2x8x32xf32> to vector<2x8x8xf32>
    %87 = vector.extract_strided_slice %38 {offsets = [0, 24, 0], sizes = [2, 8, 8], strides = [1, 1, 1]} : vector<2x32x8xf32> to vector<2x8x8xf32>
    "tpu.trace_start"() <{level = 10 : i32, message = "bqd,bdk->bqk"}> : () -> ()
    %cst_27 = arith.constant dense<0.000000e+00> : vector<2x8x8xf32>
    %88 = tpu.matmul %86, %87, %cst_27 {dimension_numbers = #tpu.dot_dimension_numbers<[2], [1], [1], [2], [0, 0, 0, 1, 1, 2], [0], [0]>} : vector<2x8x8xf32>, vector<2x8x8xf32>, vector<2x8x8xf32> -> vector<2x8x8xf32>
    "tpu.trace_stop"() : () -> ()
    %cst_28 = arith.constant dense<0xFF800000> : vector<2x8xf32>
    %89 = vector.multi_reduction <maximumf>, %88, %cst_28 [2] : vector<2x8x8xf32> to vector<2x8xf32>
    %90 = vector.shape_cast %89 : vector<2x8xf32> to vector<2x8x1xf32>
    %91 = vector.broadcast %90 : vector<2x8x1xf32> to vector<2x8x8xf32>
    %92 = arith.subf %88, %91 : vector<2x8x8xf32>
    %93 = math.exp %92 : vector<2x8x8xf32>
    %cst_29 = arith.constant dense<0.000000e+00> : vector<2x8xf32>
    %94 = vector.multi_reduction <add>, %93, %cst_29 [2] : vector<2x8x8xf32> to vector<2x8xf32>
    %95 = vector.shape_cast %94 : vector<2x8xf32> to vector<2x8x1xf32>
    %96 = tpu.reciprocal %95 : vector<2x8x1xf32> -> vector<2x8x1xf32>
    %97 = vector.broadcast %96 : vector<2x8x1xf32> to vector<2x8x8xf32>
    %98 = arith.mulf %93, %97 : vector<2x8x8xf32>
    %99 = vector.extract_strided_slice %37 {offsets = [0, 0, 96], sizes = [2, 8, 32], strides = [1, 1, 1]} : vector<2x8x128xf32> to vector<2x8x32xf32>
    "tpu.trace_start"() <{level = 10 : i32, message = "bqk,bkd->bqd"}> : () -> ()
    %cst_30 = arith.constant dense<0.000000e+00> : vector<2x8x32xf32>
    %100 = tpu.matmul %98, %99, %cst_30 {dimension_numbers = #tpu.dot_dimension_numbers<[2], [1], [1], [2], [0, 0, 0, 1, 1, 2], [0], [0]>} : vector<2x8x8xf32>, vector<2x8x32xf32>, vector<2x8x32xf32> -> vector<2x8x32xf32>
    "tpu.trace_stop"() : () -> ()
    %101 = arith.addf %85, %100 : vector<2x8x32xf32>
    %102 = vector.shape_cast %101 : vector<2x8x32xf32> to vector<16x32xf32>
    %103 = arith.addf %1, %102 : vector<16x32xf32>
    %cst_31 = arith.constant dense<0.000000e+00> : vector<16xf32>
    %104 = vector.multi_reduction <add>, %103, %cst_31 [1] : vector<16x32xf32> to vector<16xf32>
    %105 = vector.shape_cast %104 : vector<16xf32> to vector<16x1xf32>
    %cst_32 = arith.constant 3.200000e+01 : f32
    %106 = vector.broadcast %cst_32 : f32 to vector<16x1xf32>
    %107 = arith.divf %105, %106 : vector<16x1xf32>
    %108 = vector.broadcast %107 : vector<16x1xf32> to vector<16x32xf32>
    %109 = arith.subf %103, %108 : vector<16x32xf32>
    %110 = arith.mulf %109, %109 : vector<16x32xf32>
    %cst_33 = arith.constant dense<0.000000e+00> : vector<16xf32>
    %111 = vector.multi_reduction <add>, %110, %cst_33 [1] : vector<16x32xf32> to vector<16xf32>
    %112 = vector.shape_cast %111 : vector<16xf32> to vector<16x1xf32>
    %cst_34 = arith.constant 0.0322580636 : f32
    %113 = vector.broadcast %cst_34 : f32 to vector<16x1xf32>
    %114 = arith.mulf %112, %113 : vector<16x1xf32>
    %115 = math.sqrt %114 : vector<16x1xf32>
    %cst_35 = arith.constant 9.99999997E-7 : f32
    %116 = vector.broadcast %cst_35 : f32 to vector<16x1xf32>
    %117 = arith.addf %115, %116 : vector<16x1xf32>
    %118 = tpu.reciprocal %117 : vector<16x1xf32> -> vector<16x1xf32>
    %119 = vector.broadcast %107 : vector<16x1xf32> to vector<16x32xf32>
    %120 = arith.subf %103, %119 : vector<16x32xf32>
    %121 = vector.broadcast %4 : vector<1x32xf32> to vector<16x32xf32>
    %122 = arith.mulf %121, %120 : vector<16x32xf32>
    %123 = vector.broadcast %118 : vector<16x1xf32> to vector<16x32xf32>
    %124 = arith.mulf %122, %123 : vector<16x32xf32>
    %125 = vector.broadcast %5 : vector<1x32xf32> to vector<16x32xf32>
    %126 = arith.addf %124, %125 : vector<16x32xf32>
    %c0_36 = arith.constant 0 : index
    %c0_37 = arith.constant 0 : index
    %127 = vector.load %arg3[%c0_36, %c0_37] : memref<32x64xf32, #tpu.memory_space<vmem>>, vector<32x64xf32>
    %cst_38 = arith.constant dense<0.000000e+00> : vector<16x64xf32>
    %128 = tpu.matmul %126, %127, %cst_38 {dimension_numbers = #tpu.dot_dimension_numbers<[1], [0], [0], [1], [0, 0, 1, 1], [], []>} : vector<16x32xf32>, vector<32x64xf32>, vector<16x64xf32> -> vector<16x64xf32>
    %c0_39 = arith.constant 0 : index
    %c0_40 = arith.constant 0 : index
    %129 = vector.load %arg6[%c0_39, %c0_40] : memref<1x64xf32, #tpu.memory_space<vmem>>, vector<1x64xf32>
    %130 = vector.broadcast %129 : vector<1x64xf32> to vector<16x64xf32>
    %131 = arith.addf %128, %130 : vector<16x64xf32>
    %cst_41 = arith.constant 0.000000e+00 : f32
    %132 = vector.broadcast %cst_41 : f32 to vector<16x64xf32>
    %133 = arith.maximumf %131, %132 : vector<16x64xf32>
    %c0_42 = arith.constant 0 : index
    %c0_43 = arith.constant 0 : index
    %134 = vector.load %arg4[%c0_42, %c0_43] : memref<64x32xf32, #tpu.memory_space<vmem>>, vector<64x32xf32>
    %cst_44 = arith.constant dense<0.000000e+00> : vector<16x32xf32>
    %135 = tpu.matmul %133, %134, %cst_44 {dimension_numbers = #tpu.dot_dimension_numbers<[1], [0], [0], [1], [0, 0, 1, 1], [], []>} : vector<16x64xf32>, vector<64x32xf32>, vector<16x32xf32> -> vector<16x32xf32>
    %136 = vector.broadcast %6 : vector<1x32xf32> to vector<16x32xf32>
    %137 = arith.addf %135, %136 : vector<16x32xf32>
    %138 = arith.addf %103, %137 : vector<16x32xf32>
    %139 = vector.shape_cast %138 : vector<16x32xf32> to vector<2x8x32xf32>
    %c0_45 = arith.constant 0 : index
    %c0_46 = arith.constant 0 : index
    %c0_47 = arith.constant 0 : index
    %140 = vector.load %arg7[%c0_45, %c0_46, %c0_47] : memref<2x8x32xf32, #tpu.memory_space<vmem>>, vector<2x8x32xf32>
    tpu.vector_store %arg7[%c0_45, %c0_46, %c0_47], %139 {strides = array<i32>} : memref<2x8x32xf32, #tpu.memory_space<vmem>>, vector<2x8x32xf32>,
    return
  }
  func.func @transform_0(%arg0: i32) -> (i32, i32, i32) {
    %c0_i32 = arith.constant 0 : i32
    %c0_i32_0 = arith.constant 0 : i32
    %c0_i32_1 = arith.constant 0 : i32
    return %arg0, %c0_i32, %c0_i32_0 : i32, i32, i32
  }
  func.func @transform_1(%arg0: i32) -> (i32, i32) {
    %c0_i32 = arith.constant 0 : i32
    %c0_i32_0 = arith.constant 0 : i32
    %c0_i32_1 = arith.constant 0 : i32
    return %c0_i32, %c0_i32_0 : i32, i32
  }
  func.func @transform_2(%arg0: i32) -> (i32, i32) {
    %c0_i32 = arith.constant 0 : i32
    %c0_i32_0 = arith.constant 0 : i32
    %c0_i32_1 = arith.constant 0 : i32
    return %c0_i32, %c0_i32_0 : i32, i32
  }
  func.func @transform_3(%arg0: i32) -> (i32, i32) {
    %c0_i32 = arith.constant 0 : i32
    %c0_i32_0 = arith.constant 0 : i32
    %c0_i32_1 = arith.constant 0 : i32
    return %c0_i32, %c0_i32_0 : i32, i32
  }
  func.func @transform_4(%arg0: i32) -> (i32, i32) {
    %c0_i32 = arith.constant 0 : i32
    %c0_i32_0 = arith.constant 0 : i32
    %c0_i32_1 = arith.constant 0 : i32
    return %c0_i32, %c0_i32_0 : i32, i32
  }
  func.func @transform_5(%arg0: i32) -> (i32, i32) {
    %c0_i32 = arith.constant 0 : i32
    %c0_i32_0 = arith.constant 0 : i32
    %c0_i32_1 = arith.constant 0 : i32
    return %c0_i32, %c0_i32_0 : i32, i32
  }
  func.func @transform_6(%arg0: i32) -> (i32, i32, i32) {
    %c0_i32 = arith.constant 0 : i32
    %c0_i32_0 = arith.constant 0 : i32
    %c0_i32_1 = arith.constant 0 : i32
    return %arg0, %c0_i32, %c0_i32_0 : i32, i32, i32
  }
}

</mosaic_0001>

<bundles_post_ra>
// kernel: tpu_custom_call.1
= control target key start
LH: loop header
LB: loop body
LE: loop exit
PB: predicated region body
PF: predicated region fallthrough
CT: control target
= control target key end

     0   :  { %11 = vsyncpa [#allocation3], 0  ;;  %s2431_s0 = inlined_call_operand.hbm [shape: f32[2,8,32], index: 0, kind: input, shape index: {}]   ;;  %s2432_s1 = inlined_call_operand.vmem [shape: f32[32,192], index: 1, kind: input, shape index: {}]   ;;  %s2433_s2 = inlined_call_operand.vmem [shape: f32[32,64], index: 2, kind: input, shape index: {}]   ;;  %s2434_s3 = inlined_call_operand.vmem [shape: f32[64,32], index: 3, kind: input, shape index: {}]   ;;  %s2435_s4 = inlined_call_operand.vmem [shape: f32[5,32], index: 4, kind: input, shape index: {}]   ;;  %s2436_s5 = inlined_call_operand.vmem [shape: f32[1,64], index: 5, kind: input, shape index: {}]   ;;  %s2437_s6 = inlined_call_operand.hbm [shape: f32[2,8,32], index: 6, kind: output, shape index: {}]  }
   0x1   :  { %12 = vsyncpa [#allocation4], 0  ;;  %s2113_s21 = smov [#allocation2]   ;;  %s2065_s25 = scalar_lea.hbm %s2431_s0, 256 }
   0x2   :  { %s18_s22 = sshll.u32 %s2113_s21, 4  ;;  %p2066_p0 = scmp.ne.s32.totalorder %s2431_s0, %s2065_s25  ;;  %s19_s22 = int_to_ptr.vmem [resolvable:$true] %s18_s22 }
   0x3   :  { %p2069_p1 = scmp.lt.u32.totalorder %s2065_s25, %s2431_s0 }
   0x5   :  { %p2071_p2 = pnand %p2069_p1, %p2066_p0 }
   0x7   :  { %2074 = shalt.err (!%p2071_p2)
}
   0x8   :  { %s2075_s30 = scalar_lea.vmem %s19_s22, 256  ;;  %p2080_p4 = scmp.lt.s32.totalorder %s19_s22, %s19_s22 }
   0x9   :  { %p2076_p3 = scmp.ne.s32.totalorder %s19_s22, %s2075_s30  ;;  %p2081_p5 = scmp.lt.s32.totalorder %s2075_s30, %s2075_s30 }
   0xb   :  { %p2082_p6 = por %p2081_p5, %p2080_p4 }
   0xd   :  { %p2083_p7 = pnand %p2082_p6, %p2076_p3 }
   0xf   :  { %2086 = shalt.err (!%p2083_p7)
}
  0x10   :  { %s2114_s7 = smov 128   ;;  %s2115_s8 = smov 8  }
  0x11   :  { %24 = dma.hbm_to_vmem [thread:$0]  %s2431_s0, 256, %s19_s22, [#allocation3], %s2114_s7, %s2114_s7, %s2115_s8  }
  0x12   :  { %2109 = dma.done.wait [#allocation3], 256  }
  0x13   :  { %2110 = vsyncadd [#allocation3], 4294967040  ;;  %vm45_vm0 = vcmask 261120   ;;  %v2178_v0 = vld [vmem:[#allocation2] sm:$0xff]  ;;  %v2180_v1 = vld [vmem:[#allocation2 + $0x8] sm:$0xff]  ;;  %v2116_v21 = vmov 0.0  }
  0x14   :  { %v46_v2 = vsel %vm45_vm0, %v2178_v0, 0.0  ;;  %v49_v3 = vsel %vm45_vm0, %v2180_v1, 0.0  ;;  %v100_v14 = vld [vmem:[%s2432_s1 + $0x8] sm:$0xff]  ;;  %v102_v15 = vld [vmem:[%s2432_s1 + $0x18] sm:$0xff]  ;;  %v99_v16 = vld [vmem:[%s2432_s1] sm:$0xff]  ;;  %177 = vmatprep.mubr.f32.mxu0 %v2116_v21  ;;  %183 = vmatprep.mubr.f32.mxu1 %v2116_v21  ;;  %vm2117_vm5 = vmmov 0  }
  0x15   :  { %47 = vadd.xlane.f32.xlu0 %v46_v2  ;;  %v1966_v17 = vpack.c.bf16 %v102_v15, %v100_v14  ;;  %v101_v18 = vld [vmem:[%s2432_s1 + $0x10] sm:$0xff]  ;;  %v104_v19 = vld [vmem:[%s2432_s1 + $0x28] sm:$0xff]  ;;  %v106_v20 = vld [vmem:[%s2432_s1 + $0x38] sm:$0xff]  ;;  %s2118_s29 = smov 96   ;;  %s2119_s30 = smov 120   ;;  %vm193_vm6 = vcmask 64512  }
  0x16   :  { %v1968_v22 = vpack.c.bf16 %v101_v18, %v99_v16  ;;  %v1970_v23 = vpack.c.bf16 %v106_v20, %v104_v19  ;;  %v103_v24 = vld [vmem:[%s2432_s1 + $0x20] sm:$0xff]  ;;  %v105_v25 = vld [vmem:[%s2432_s1 + $0x30] sm:$0xff]  ;;  %s2120_s9 = smov 88   ;;  %s2121_s10 = smov 32   ;;  %vm1669_vm11 = vcmask 523264  }
  0x17   :  { %1967 = vmatprep.subr.bf16.mxu0 %v1966_v17  ;;  %1998 = vmatprep.subr.bf16.mxu1 %v1966_v17  ;;  %v1972_v26 = vpack.c.bf16 %v105_v25, %v103_v24  ;;  %v1772_v43 = vld [vmem:[%s2435_s4] ss:$0 sm:$0xff]  ;;  %v1773_v46 = vld [vmem:[%s2435_s4 + $0x1] ss:$0 sm:$0xff]  ;;  %s2122_s0 = smov 64   ;;  %s2123_s11 = smov 80  }
  0x18   :  { %1969 = vmatpush1.bf16.msra.mxu0 %v1968_v22  ;;  %2000 = vmatpush1.bf16.msra.mxu1 %v1968_v22  ;;  %s2124_s12 = smov 112   ;;  %s2125_s13 = smov 72  }
  0x19   :  { %50 = vadd.xlane.f32.xlu0 %v49_v3  ;;  %1971 = vmatprep.subr.bf16.mxu0 %v1970_v23  ;;  %s2126_s14 = smov 104  }
  0x1a   :  { %1999 = vmatprep.subr.bf16.mxu1 %v1970_v23 }
  0x1c   :  { %1973 = vmatpush1.bf16.msra.mxu0 %v1972_v26  ;;  %2001 = vmatpush1.bf16.msra.mxu1 %v1972_v26 }
  0x1d   :  { %1856 = vmatprep.subr.mxu1 %v2116_v21  ;;  %1871 = vmatprep.subr.mxu0 %v2116_v21 }
  0xa2   :  { %v48_v4 = vpop.xlane.xlu0 %47 }
  0xa3   :  { %v53_v5 = vmul.f32 0.03125, %v48_v4 }
  0xa5   :  { %v55_v6 = vsub.f32 %v2178_v0, %v53_v5 }
  0xa6   :  { %v51_v7 = vpop.xlane.xlu0 %50 }
  0xa7   :  { %v54_v8 = vmul.f32 0.03125, %v51_v7  ;;  %v57_v9 = vmul.f32 %v55_v6, %v55_v6  ;;  %v89_v44 = vmul.f32 %v1772_v43, %v55_v6 }
  0xa9   :  { %v56_v10 = vsub.f32 %v2180_v1, %v54_v8  ;;  %v59_v11 = vsel %vm45_vm0, %v57_v9, 0.0 }
  0xaa   :  { %60 = vadd.xlane.f32.xlu1 %v59_v11 }
  0xab   :  { %v58_v12 = vmul.f32 %v56_v10, %v56_v10  ;;  %v90_v48 = vmul.f32 %v1772_v43, %v56_v10 }
  0xad   :  { %v62_v13 = vsel %vm45_vm0, %v58_v12, 0.0 }
  0xae   :  { %63 = vadd.xlane.f32.xlu1 %v62_v13 }
 0x137   :  { %v61_v27 = vpop.xlane.xlu1 %60 }
 0x138   :  { %v65_v28 = vmul.f32 0.032258064, %v61_v27 }
 0x13a   :  { %2017 = vrsqrt.f32 %v65_v28  ;;  %vm69_vm1 = vcmp.eq.f32.partialorder %v65_v28, inf  ;;  %v72_v33 = vand.u32 2147483648, %v65_v28  ;;  %vm71_vm2 = vcmp.eq.f32.partialorder %v65_v28, 0.0 }
 0x13b   :  { %v64_v29 = vpop.xlane.xlu1 %63 }
 0x13c   :  { %v66_v30 = vmul.f32 0.032258064, %v64_v29 }
 0x13e   :  { %2019 = vrsqrt.f32 %v66_v30  ;;  %vm76_vm3 = vcmp.eq.f32.partialorder %v66_v30, inf  ;;  %v79_v39 = vand.u32 2147483648, %v66_v30  ;;  %vm78_vm4 = vcmp.eq.f32.partialorder %v66_v30, 0.0 }
 0x144   :  { %v2018_v31 = vpop.eup %2017 }
 0x145   :  { %v68_v32 = vmul.f32 %v2018_v31, %v65_v28 }
 0x147   :  { %v70_v34 = vsel %vm69_vm1, %v65_v28, %v68_v32 }
 0x148   :  { %v2020_v35 = vpop.eup %2019  ;;  %v73_v36 = vsel %vm71_vm2, %v72_v33, %v70_v34 }
 0x149   :  { %v75_v37 = vmul.f32 %v2020_v35, %v66_v30  ;;  %v81_v38 = vadd.f32 1e-06, %v73_v36 }
 0x14b   :  { %v77_v40 = vsel %vm76_vm3, %v66_v30, %v75_v37  ;;  %2021 = vrcp.f32 %v81_v38 }
 0x14c   :  { %v80_v41 = vsel %vm78_vm4, %v79_v39, %v77_v40 }
 0x14d   :  { %v82_v42 = vadd.f32 1e-06, %v80_v41 }
 0x14f   :  { %2023 = vrcp.f32 %v82_v42 }
 0x155   :  { %v2022_v45 = vpop.eup %2021 }
 0x156   :  { %v91_v47 = vmul.f32 %v2022_v45, %v89_v44 }
 0x158   :  { %v97_v49 = vadd.f32 %v1773_v46, %v91_v47 }
 0x159   :  { %v2024_v50 = vpop.eup %2023 }
 0x15a   :  { %1774 = vmatmul.mubr.msk.f32.vlgmr.msra.gmra.mrb[0].mxu0 %vm45_vm0, %v97_v49  ;;  %v92_v51 = vmul.f32 %v2024_v50, %v90_v48 }
 0x15b   :  { %1873 = vmatprep.mubr.msk.f32.mxu0 %vm2117_vm5, %v2116_v21 }
 0x15c   :  { %v98_v52 = vadd.f32 %v1773_v46, %v92_v51 }
 0x15e   :  { %1775 = vmatmul.mubr.msk.f32.vlgmr.msra.gmra.mrb[0].mxu1 %vm45_vm0, %v98_v52 }
 0x15f   :  { %1858 = vmatprep.mubr.msk.f32.mxu1 %vm2117_vm5, %v2116_v21 }
 0x22d   :  { %v2230_v53 = vpop.f32.mrb[0].mxu0 }
 0x22e   :  { %191 = vrot.lane.b32.xlu0 %v2230_v53, %s2118_s29  ;;  %v2234_v54 = vpop.f32.mrb[1].mxu0 }
 0x231   :  { %v2236_v55 = vpop.f32.mrb[0].mxu1 }
 0x232   :  { %367 = vrot.lane.b32.xlu0 %v2230_v53, %s2119_s30  ;;  %269 = vrot.lane.b32.xlu1 %v2236_v55, %s2118_s29  ;;  %v2241_v56 = vpop.f32.mrb[1].mxu1 }
 0x236   :  { %369 = vrot.lane.b32.xlu1 %v2230_v53, %s2120_s9 }
 0x23a   :  { %447 = vrot.lane.b32.xlu1 %v2236_v55, %s2120_s9 }
 0x23e   :  { %445 = vrot.lane.b32.xlu1 %v2236_v55, %s2119_s30 }
 0x2a0   :  { %v192_v57 = vpop.permute.xlu0 %191 }
 0x2a1   :  { %1857 = vmatpush3.xpose.msk.msra.mxu1 %vm193_vm6, %v192_v57 }
 0x2a2   :  { %1861 = vmatprep.subr.mxu1 %v2116_v21 }
 0x2a4   :  { %v270_v58 = vpop.permute.xlu1 %269  ;;  %1859 = vmatmul.mubr.msk.f32.vlgmr.msra.gmra.mrb[2].mxu1 %vm193_vm6, %v2230_v53  ;;  %v368_v60 = vpop.permute.xlu0 %367 }
 0x2a5   :  { %1862 = vmatpush3.xpose.msk.msra.mxu1 %vm193_vm6, %v270_v58  ;;  %1863 = vmatprep.mubr.msk.f32.mxu1 %vm2117_vm5, %v2116_v21 }
 0x2a6   :  { %1866 = vmatprep.subr.mxu1 %v2116_v21 }
 0x2a8   :  { %v370_v59 = vpop.permute.xlu1 %369  ;;  %1864 = vmatmul.mubr.msk.f32.vlgmr.msra.gmra.mrb[4].mxu1 %vm193_vm6, %v2236_v55 }
 0x2a9   :  { %1867 = vmatpush3.xpose.msk.msra.mxu1 %vm193_vm6, %v370_v59  ;;  %1868 = vmatprep.mubr.msk.f32.mxu1 %vm2117_vm5, %v2116_v21 }
 0x2aa   :  { %1876 = vmatprep.subr.mxu1 %v2116_v21 }
 0x2ac   :  { %v448_v61 = vpop.permute.xlu1 %447  ;;  %1869 = vmatmul.mubr.msk.f32.vlgmr.msra.gmra.mrb[6].mxu1 %vm193_vm6, %v368_v60 }
 0x2ad   :  { %1872 = vmatpush3.xpose.msk.msra.mxu0 %vm193_vm6, %v448_v61  ;;  %1878 = vmatprep.mubr.msk.f32.mxu1 %vm2117_vm5, %v2116_v21 }
 0x2ae   :  { %1881 = vmatprep.subr.mxu0 %v2116_v21 }
 0x2b0   :  { %v446_v62 = vpop.permute.xlu1 %445 }
 0x2b1   :  { %1874 = vmatmul.mubr.msk.f32.vlgmr.msra.gmra.mrb[2].mxu0 %vm193_vm6, %v446_v62 }
 0x2b2   :  { %1883 = vmatprep.mubr.msk.f32.mxu0 %vm2117_vm5, %v2116_v21 }
 0x377   :  { %v264_v63 = vpop.f32.mrb[2].mxu1 }
 0x378   :  { %v1860_v2 = vpop.f32.mrb[3].mxu1  ;;  %v345_v9 = vsel %vm193_vm6, %v264_v63, -inf }
 0x37b   :  { %v341_v3 = vpop.f32.mrb[4].mxu1 }
 0x37c   :  { %v1865_v4 = vpop.f32.mrb[5].mxu1  ;;  %v348_v12 = vsel %vm193_vm6, %v341_v3, -inf }
 0x37f   :  { %v441_v5 = vpop.f32.mrb[6].mxu1 }
 0x380   :  { %v1870_v6 = vpop.f32.mrb[7].mxu1  ;;  %v523_v7 = vsel %vm193_vm6, %v441_v5, -inf }
 0x381   :  { %524 = vmax.xlane.f32.xlu0 %v523_v7 }
 0x384   :  { %v519_v8 = vpop.f32.mrb[2].mxu0 }
 0x385   :  { %v1875_v10 = vpop.f32.mrb[3].mxu0  ;;  %346 = vmax.xlane.f32.xlu0 %v345_v9  ;;  %v526_v11 = vsel %vm193_vm6, %v519_v8, -inf }
 0x386   :  { %527 = vmax.xlane.f32.xlu1 %v526_v11 }
 0x389   :  { %349 = vmax.xlane.f32.xlu0 %v348_v12 }
 0x40e   :  { %v525_v13 = vpop.xlane.xlu0 %524 }
 0x40f   :  { %v529_v14 = vsub.f32 %v441_v5, %v525_v13 }
 0x411   :  { %v531_v19 = vmul.f32 1.442695, %v529_v14 }
 0x412   :  { %v347_v15 = vpop.xlane.xlu0 %346 }
 0x413   :  { %v351_v16 = vsub.f32 %v264_v63, %v347_v15  ;;  %v528_v17 = vpop.xlane.xlu1 %527 }
 0x414   :  { %v530_v18 = vsub.f32 %v519_v8, %v528_v17 }
 0x415   :  { %v353_v20 = vmul.f32 1.442695, %v351_v16 }
 0x416   :  { %v533_v22 = vmul.f32 1.442695, %v530_v18  ;;  %v350_v23 = vpop.xlane.xlu0 %349 }
 0x417   :  { %2025 = vpow2.f32 %v353_v20  ;;  %v352_v24 = vsub.f32 %v341_v3, %v350_v23 }
 0x418   :  { %2027 = vpow2.f32 %v533_v22 }
 0x419   :  { %2029 = vpow2.f32 %v531_v19  ;;  %v355_v25 = vmul.f32 1.442695, %v352_v24 }
 0x41b   :  { %2031 = vpow2.f32 %v355_v25 }
 0x421   :  { %v2026_v26 = vpop.eup %2025 }
 0x422   :  { %v2028_v27 = vpop.eup %2027  ;;  %v357_v28 = vsel %vm193_vm6, %v2026_v26, 0.0 }
 0x423   :  { %v2030_v29 = vpop.eup %2029  ;;  %358 = vadd.xlane.f32.xlu0 %v357_v28  ;;  %v538_v30 = vsel %vm193_vm6, %v2028_v27, 0.0 }
 0x424   :  { %539 = vadd.xlane.f32.xlu1 %v538_v30  ;;  %v535_v32 = vsel %vm193_vm6, %v2030_v29, 0.0 }
 0x425   :  { %v2032_v31 = vpop.eup %2031 }
 0x426   :  { %v360_v33 = vsel %vm193_vm6, %v2032_v31, 0.0 }
 0x427   :  { %536 = vadd.xlane.f32.xlu0 %v535_v32 }
 0x428   :  { %361 = vadd.xlane.f32.xlu1 %v360_v33 }
 0x439   :  { %621 = vrot.lane.b32.xlu1 %v2236_v55, %s2121_s10 }
 0x43d   :  { %545 = vrot.lane.b32.xlu0 %v2230_v53, %s2121_s10  ;;  %697 = vrot.lane.b32.xlu1 %v2230_v53, %s2122_s0 }
 0x441   :  { %851 = vrot.lane.b32.xlu0 %v2230_v53, %s2123_s11  ;;  %773 = vrot.lane.b32.xlu1 %v2236_v55, %s2122_s0 }
 0x445   :  { %849 = vrot.lane.b32.xlu0 %v2230_v53, %s2124_s12  ;;  %929 = vrot.lane.b32.xlu1 %v2236_v55, %s2123_s11 }
 0x449   :  { %927 = vrot.lane.b32.xlu1 %v2236_v55, %s2124_s12 }
 0x4b0   :  { %v359_v34 = vpop.xlane.xlu0 %358 }
 0x4b1   :  { %v540_v35 = vpop.xlane.xlu1 %539 }
 0x4b2   :  { %2033 = vrcp.f32 %v540_v35 }
 0x4b4   :  { %v537_v36 = vpop.xlane.xlu0 %536 }
 0x4b5   :  { %2035 = vrcp.f32 %v537_v36  ;;  %v362_v37 = vpop.xlane.xlu1 %361 }
 0x4b6   :  { %2037 = vrcp.f32 %v362_v37 }
 0x4b7   :  { %2039 = vrcp.f32 %v359_v34 }
 0x4b8   :  { %v546_v38 = vpop.permute.xlu0 %545 }
 0x4b9   :  { %v622_v39 = vpop.permute.xlu1 %621  ;;  %1877 = vmatpush3.msra.mxu1 %v546_v38 }
 0x4ba   :  { %1882 = vmatpush3.msra.mxu0 %v622_v39  ;;  %1886 = vmatprep.subr.mxu1 %v2116_v21 }
 0x4bb   :  { %1891 = vmatprep.subr.mxu0 %v2116_v21 }
 0x4bc   :  { %v2034_v40 = vpop.eup %2033  ;;  %v852_v51 = vpop.permute.xlu0 %851 }
 0x4bd   :  { %v544_v41 = vmul.f32 %v2034_v40, %v2028_v27  ;;  %v698_v42 = vpop.permute.xlu1 %697 }
 0x4bf   :  { %v2036_v43 = vpop.eup %2035  ;;  %1884 = vmatmul.mubr.msk.f32.vlgmr.msra.gmra.mrb[4].mxu0 %vm193_vm6, %v544_v41 }
 0x4c0   :  { %v2038_v44 = vpop.eup %2037  ;;  %v543_v45 = vmul.f32 %v2036_v43, %v2030_v29  ;;  %1893 = vmatprep.mubr.msk.f32.mxu0 %vm2117_vm5, %v2116_v21  ;;  %v850_v57 = vpop.permute.xlu0 %849 }
 0x4c1   :  { %v2040_v46 = vpop.eup %2039  ;;  %v366_v47 = vmul.f32 %v2038_v44, %v2032_v31  ;;  %v774_v48 = vpop.permute.xlu1 %773 }
 0x4c2   :  { %1879 = vmatmul.mubr.msk.f32.vlgmr.msra.gmra.mrb[8].mxu1 %vm193_vm6, %v543_v45  ;;  %1892 = vmatpush3.msra.mxu0 %v774_v48  ;;  %v365_v49 = vmul.f32 %v2040_v46, %v2026_v26 }
 0x4c3   :  { %1887 = vmatpush3.msra.mxu1 %v698_v42  ;;  %1894 = vmatmul.mubr.msk.f32.vlgmr.msra.gmra.mrb[6].mxu0 %vm193_vm6, %v366_v47 }
 0x4c4   :  { %1888 = vmatprep.mubr.msk.f32.mxu1 %vm2117_vm5, %v2116_v21  ;;  %1896 = vmatprep.subr.mxu1 %v2116_v21 }
 0x4c5   :  { %v930_v50 = vpop.permute.xlu1 %929  ;;  %1901 = vmatprep.subr.mxu0 %v2116_v21  ;;  %1903 = vmatprep.mubr.msk.f32.mxu0 %vm2117_vm5, %v2116_v21 }
 0x4c6   :  { %1889 = vmatmul.mubr.msk.f32.vlgmr.msra.gmra.mrb[10].mxu1 %vm193_vm6, %v365_v49 }
 0x4c7   :  { %1898 = vmatprep.mubr.msk.f32.mxu1 %vm2117_vm5, %v2116_v21 }
 0x4c9   :  { %1902 = vmatpush3.xpose.msk.msra.mxu0 %vm193_vm6, %v930_v50  ;;  %v928_v52 = vpop.permute.xlu1 %927 }
 0x4ca   :  { %1897 = vmatpush3.xpose.msk.msra.mxu1 %vm193_vm6, %v852_v51  ;;  %1911 = vmatprep.subr.mxu0 %v2116_v21 }
 0x4cb   :  { %1906 = vmatprep.subr.mxu1 %v2116_v21 }
 0x4cc   :  { %1904 = vmatmul.mubr.msk.f32.vlgmr.msra.gmra.mrb[8].mxu0 %vm193_vm6, %v928_v52 }
 0x4cd   :  { %1899 = vmatmul.mubr.msk.f32.vlgmr.msra.gmra.mrb[12].mxu1 %vm193_vm6, %v850_v57  ;;  %1912 = vmatpush3.msra.mxu0 %v2241_v56 }
 0x4ce   :  { %1907 = vmatpush3.msra.mxu1 %v2234_v54  ;;  %1913 = vmatprep.mubr.msk.f32.mxu0 %vm2117_vm5, %v2116_v21 }
 0x4cf   :  { %1921 = vmatprep.subr.mxu0 %v2116_v21  ;;  %1908 = vmatprep.mubr.msk.f32.mxu1 %vm2117_vm5, %v2116_v21 }
 0x4d0   :  { %1916 = vmatprep.subr.mxu1 %v2116_v21 }
 0x592   :  { %v693_v58 = vpop.f32.mrb[4].mxu0 }
 0x593   :  { %v1885_v59 = vpop.f32.mrb[5].mxu0 }
 0x595   :  { %v617_v60 = vpop.f32.mrb[8].mxu1 }
 0x596   :  { %v1880_v61 = vpop.f32.mrb[9].mxu1  ;;  %v845_v62 = vpop.f32.mrb[6].mxu0 }
 0x597   :  { %v846_v63 = vadd.f32 %v845_v62, %v693_v58  ;;  %v1895_v2 = vpop.f32.mrb[7].mxu0 }
 0x599   :  { %v769_v3 = vpop.f32.mrb[10].mxu1 }
 0x59a   :  { %v770_v4 = vadd.f32 %v769_v3, %v617_v60  ;;  %v1890_v5 = vpop.f32.mrb[11].mxu1 }
 0x59f   :  { %v1001_v6 = vpop.f32.mrb[8].mxu0 }
 0x5a0   :  { %v923_v7 = vpop.f32.mrb[12].mxu1  ;;  %v1905_v8 = vpop.f32.mrb[9].mxu0  ;;  %v1008_v9 = vsel %vm193_vm6, %v1001_v6, -inf }
 0x5a1   :  { %v1900_v10 = vpop.f32.mrb[13].mxu1  ;;  %1009 = vmax.xlane.f32.xlu1 %v1008_v9  ;;  %v1005_v11 = vsel %vm193_vm6, %v923_v7, -inf }
 0x5a2   :  { %1006 = vmax.xlane.f32.xlu0 %v1005_v11 }
 0x5b2   :  { %1255 = vrot.lane.b32.xlu1 %v2236_v55, %s2125_s13 }
 0x5b6   :  { %1175 = vrot.lane.b32.xlu1 %v2230_v53, %s2126_s14 }
 0x5ba   :  { %1253 = vrot.lane.b32.xlu1 %v2236_v55, %s2126_s14 }
 0x62e   :  { %v1010_v12 = vpop.xlane.xlu1 %1009 }
 0x62f   :  { %v1012_v13 = vsub.f32 %v1001_v6, %v1010_v12  ;;  %v1007_v14 = vpop.xlane.xlu0 %1006 }
 0x630   :  { %v1011_v15 = vsub.f32 %v923_v7, %v1007_v14 }
 0x631   :  { %v1015_v16 = vmul.f32 1.442695, %v1012_v13 }
 0x632   :  { %v1013_v17 = vmul.f32 1.442695, %v1011_v15  ;;  %v1256_v24 = vpop.permute.xlu1 %1255 }
 0x633   :  { %2041 = vpow2.f32 %v1015_v16 }
 0x634   :  { %2043 = vpow2.f32 %v1013_v17 }
 0x636   :  { %v1176_v26 = vpop.permute.xlu1 %1175 }
 0x63d   :  { %v2042_v18 = vpop.eup %2041 }
 0x63e   :  { %v1020_v19 = vsel %vm193_vm6, %v2042_v18, 0.0  ;;  %v2044_v20 = vpop.eup %2043 }
 0x63f   :  { %1021 = vadd.xlane.f32.xlu0 %v1020_v19  ;;  %v1017_v22 = vsel %vm193_vm6, %v2044_v20, 0.0  ;;  %v1564_v19 = vld [vmem:[%s2433_s2 + $0x8] sm:$0xff] }
 0x643   :  { %1018 = vadd.xlane.f32.xlu0 %v1017_v22 }
 0x659   :  { %1177 = vrot.lane.b32.xlu0 %v2230_v53, %s2125_s13  ;;  %v1254_v53 = vpop.permute.xlu1 %1253 }
 0x6cc   :  { %v1022_v23 = vpop.xlane.xlu0 %1021 }
 0x6cd   :  { %2045 = vrcp.f32 %v1022_v23  ;;  %v1566_v23 = vld [vmem:[%s2433_s2 + $0x18] sm:$0xff] }
 0x6d0   :  { %v1019_v55 = vpop.xlane.xlu0 %1018 }
 0x6d1   :  { %2047 = vrcp.f32 %v1019_v55 }
 0x6d4   :  { %v1178_v30 = vpop.permute.xlu0 %1177 }
 0x6d7   :  { %v2046_v25 = vpop.eup %2045 }
 0x6d8   :  { %v1026_v27 = vmul.f32 %v2046_v25, %v2042_v18  ;;  %v1563_v18 = vld [vmem:[%s2433_s2] sm:$0xff]  ;;  %v1658_v25 = vld [vmem:[%s2434_s3 + $0x8] sm:$0xff] }
 0x6d9   :  { %v1974_v22 = vpack.c.bf16 %v1564_v19, %v1563_v18 }
 0x6da   :  { %1914 = vmatmul.mubr.msk.f32.vlgmr.msra.gmra.mrb[10].mxu0 %vm193_vm6, %v1026_v27 }
 0x6db   :  { %v2048_v28 = vpop.eup %2047  ;;  %1922 = vmatpush3.xpose.msk.msra.mxu0 %vm193_vm6, %v1256_v24  ;;  %1923 = vmatprep.mubr.msk.f32.mxu0 %vm2117_vm5, %v2116_v21  ;;  %v1657_v24 = vld [vmem:[%s2434_s3] sm:$0xff] }
 0x6dc   :  { %v1025_v29 = vmul.f32 %v2048_v28, %v2044_v20  ;;  %1931 = vmatprep.subr.mxu0 %v2116_v21  ;;  %v1565_v20 = vld [vmem:[%s2433_s2 + $0x10] sm:$0xff]  ;;  %v1982_v27 = vpack.c.bf16 %v1658_v25, %v1657_v24  ;;  %v1660_v28 = vld [vmem:[%s2434_s3 + $0x18] sm:$0xff] }
 0x6dd   :  { %v1978_v55 = vpack.c.bf16 %v1566_v23, %v1565_v20 }
 0x6de   :  { %1909 = vmatmul.mubr.msk.f32.vlgmr.msra.gmra.mrb[14].mxu1 %vm193_vm6, %v1025_v29  ;;  %1924 = vmatmul.mubr.msk.f32.vlgmr.msra.gmra.mrb[12].mxu0 %vm193_vm6, %v1254_v53  ;;  %v1661_v53 = vld [vmem:[%s2434_s3 + $0x20] sm:$0xff] }
 0x6df   :  { %1917 = vmatpush3.xpose.msk.msra.mxu1 %vm193_vm6, %v1178_v30  ;;  %1918 = vmatprep.mubr.msk.f32.mxu1 %vm2117_vm5, %v2116_v21  ;;  %v1662_v30 = vld [vmem:[%s2434_s3 + $0x28] sm:$0xff] }
 0x6e0   :  { %1926 = vmatprep.subr.mxu1 %v2116_v21  ;;  %1933 = vmatprep.mubr.msk.f32.mxu0 %vm2117_vm5, %v2116_v21 }
 0x6e2   :  { %1919 = vmatmul.mubr.msk.f32.vlgmr.msra.gmra.mrb[16].mxu1 %vm193_vm6, %v1176_v26  ;;  %v1659_v26 = vld [vmem:[%s2434_s3 + $0x10] sm:$0xff] }
 0x6e3   :  { %1928 = vmatprep.mubr.msk.f32.mxu1 %vm2117_vm5, %v2116_v21  ;;  %v1986_v29 = vpack.c.bf16 %v1660_v28, %v1659_v26 }
 0x7ad   :  { %v1169_v31 = vpop.f32.mrb[10].mxu0 }
 0x7ae   :  { %v1174_v32 = vadd.f32 %v1169_v31, %v846_v63  ;;  %v1915_v33 = vpop.f32.mrb[11].mxu0  ;;  %v1990_v31 = vpack.c.bf16 %v1662_v30, %v1661_v53 }
 0x7b1   :  { %v1096_v34 = vpop.f32.mrb[14].mxu1  ;;  %v1327_v35 = vpop.f32.mrb[12].mxu0 }
 0x7b2   :  { %v1173_v36 = vadd.f32 %v1096_v34, %v770_v4  ;;  %v1910_v37 = vpop.f32.mrb[15].mxu1  ;;  %v1925_v38 = vpop.f32.mrb[13].mxu0  ;;  %v1334_v39 = vsel %vm193_vm6, %v1327_v35, -inf }
 0x7b3   :  { %1335 = vmax.xlane.f32.xlu1 %v1334_v39 }
 0x7b5   :  { %v1249_v40 = vpop.f32.mrb[16].mxu1 }
 0x7b6   :  { %v1920_v41 = vpop.f32.mrb[17].mxu1  ;;  %v1331_v42 = vsel %vm193_vm6, %v1249_v40, -inf }
 0x7b7   :  { %1332 = vmax.xlane.f32.xlu0 %v1331_v42 }
 0x7c4   :  { %1431 = vrot.lane.b32.xlu1 %v2241_v56, %s2118_s29 }
 0x840   :  { %v1336_v21 = vpop.xlane.xlu1 %1335 }
 0x841   :  { %v1338_v43 = vsub.f32 %v1327_v35, %v1336_v21 }
 0x843   :  { %v1341_v44 = vmul.f32 1.442695, %v1338_v43 }
 0x844   :  { %v1432_v45 = vpop.permute.xlu1 %1431  ;;  %v1333_v46 = vpop.xlane.xlu0 %1332 }
 0x845   :  { %2049 = vpow2.f32 %v1341_v44  ;;  %v1337_v47 = vsub.f32 %v1249_v40, %v1333_v46  ;;  %1932 = vmatpush3.msra.mxu0 %v1432_v45 }
 0x846   :  { %1983 = vmatprep.subr.bf16.mxu0 %v1982_v27 }
 0x847   :  { %v1339_v48 = vmul.f32 1.442695, %v1337_v47  ;;  %v1800_v47 = vld [vmem:[%s2435_s4 + $0x2] ss:$0 sm:$0xff] }
 0x849   :  { %2051 = vpow2.f32 %v1339_v48 }
 0x84f   :  { %v2050_v49 = vpop.eup %2049 }
 0x850   :  { %v1346_v50 = vsel %vm193_vm6, %v2050_v49, 0.0 }
 0x851   :  { %1347 = vadd.xlane.f32.xlu0 %v1346_v50 }
 0x853   :  { %v2052_v51 = vpop.eup %2051 }
 0x854   :  { %v1343_v52 = vsel %vm193_vm6, %v2052_v51, 0.0 }
 0x855   :  { %1344 = vadd.xlane.f32.xlu0 %v1343_v52 }
 0x86b   :  { %1354 = vrot.lane.b32.xlu0 %v2234_v54, %s2118_s29 }
 0x8de   :  { %v1348_v56 = vpop.xlane.xlu0 %1347 }
 0x8df   :  { %2053 = vrcp.f32 %v1348_v56  ;;  %v1801_v56 = vld [vmem:[%s2435_s4 + $0x3] ss:$0 sm:$0xff] }
 0x8e2   :  { %v1345_v57 = vpop.xlane.xlu0 %1344 }
 0x8e3   :  { %2055 = vrcp.f32 %v1345_v57 }
 0x8e6   :  { %v1355_v58 = vpop.permute.xlu0 %1354 }
 0x8e7   :  { %1927 = vmatpush3.msra.mxu1 %v1355_v58 }
 0x8e8   :  { %1975 = vmatprep.subr.bf16.mxu1 %v1974_v22 }
 0x8e9   :  { %v2054_v59 = vpop.eup %2053 }
 0x8ea   :  { %v1352_v60 = vmul.f32 %v2054_v59, %v2050_v49 }
 0x8ec   :  { %1934 = vmatmul.mubr.msk.f32.vlgmr.msra.gmra.mrb[14].mxu0 %vm193_vm6, %v1352_v60  ;;  %v1663_v60 = vld [vmem:[%s2434_s3 + $0x30] sm:$0xff] }
 0x8ed   :  { %v2056_v61 = vpop.eup %2055  ;;  %1985 = vmatpush3.bf16.msra.mxu0 %v1982_v27 }
 0x8ee   :  { %v1351_v62 = vmul.f32 %v2056_v61, %v2052_v51  ;;  %1987 = vmatprep.subr.bf16.mxu0 %v1986_v29  ;;  %v1664_v61 = vld [vmem:[%s2434_s3 + $0x38] sm:$0xff]  ;;  %s2127_s3 = smov [#allocation5]  }
 0x8ef   :  { %s1760_s22 = sshll.u32 %s2127_s3, 4  ;;  %s1761_s22 = int_to_ptr.vmem [resolvable:$true] %s1760_s22 }
 0x8f0   :  { %1929 = vmatmul.mubr.msk.f32.vlgmr.msra.gmra.mrb[18].mxu1 %vm193_vm6, %v1351_v62  ;;  %v1994_v62 = vpack.c.bf16 %v1664_v61, %v1663_v60  ;;  %p2092_p9 = scmp.lt.s32.totalorder %s1761_s22, %s1761_s22 }
 0x8f1   :  { %1977 = vmatpush3.bf16.msra.mxu1 %v1974_v22  ;;  %1989 = vmatpush3.bf16.msra.mxu0 %v1986_v29 }
 0x8f2   :  { %1979 = vmatprep.subr.bf16.mxu1 %v1978_v55  ;;  %1991 = vmatprep.subr.bf16.mxu0 %v1990_v31 }
 0x8f5   :  { %1981 = vmatpush3.bf16.msra.mxu1 %v1978_v55  ;;  %1993 = vmatpush3.bf16.msra.mxu0 %v1990_v31 }
 0x8f6   :  { %1995 = vmatprep.subr.bf16.mxu0 %v1994_v62 }
 0x8f9   :  { %1997 = vmatpush3.bf16.msra.mxu0 %v1994_v62 }
 0x9bf   :  { %v1503_v63 = vpop.f32.mrb[14].mxu0 }
 0x9c0   :  { %v1508_v2 = vadd.f32 %v1503_v63, %v1174_v32  ;;  %v1935_v3 = vpop.f32.mrb[15].mxu0  ;;  %v1802_v63 = vld [vmem:[%s2436_s5] ss:$0 sm:$0xff]  ;;  %s2087_s5 = scalar_lea.vmem %s1761_s22, 256 }
 0x9c1   :  { %p2088_p8 = scmp.ne.s32.totalorder %s1761_s22, %s2087_s5  ;;  %p2093_p10 = scmp.lt.s32.totalorder %s2087_s5, %s2087_s5 }
 0x9c2   :  { %v2349_v4 = vadd.f32 %v1508_v2, %v2180_v1 }
 0x9c3   :  { %v1426_v54 = vpop.f32.mrb[18].mxu1  ;;  %p2094_p11 = por %p2093_p10, %p2092_p9 }
 0x9c4   :  { %v1507_v5 = vadd.f32 %v1426_v54, %v1173_v36  ;;  %v1930_v6 = vpop.f32.mrb[19].mxu1  ;;  %v1514_v7 = vsel %vm45_vm0, %v2349_v4, 0.0 }
 0x9c5   :  { %1515 = vadd.xlane.f32.xlu0 %v1514_v7  ;;  %p2095_p12 = pnand %p2094_p11, %p2088_p8 }
 0x9c6   :  { %v2354_v8 = vadd.f32 %v1507_v5, %v2178_v0 }
 0x9c8   :  { %v1511_v9 = vsel %vm45_vm0, %v2354_v8, 0.0 }
 0x9c9   :  { %1512 = vadd.xlane.f32.xlu1 %v1511_v9  ;;  %v1805_v9 = vld [vmem:[%s2435_s4 + $0x4] ss:$0 sm:$0xff] }
 0xa52   :  { %v1516_v10 = vpop.xlane.xlu0 %1515 }
 0xa53   :  { %v1518_v11 = vmul.f32 0.03125, %v1516_v10 }
 0xa55   :  { %v1520_v12 = vsub.f32 %v2349_v4, %v1518_v11 }
 0xa56   :  { %v1513_v1 = vpop.xlane.xlu1 %1512 }
 0xa57   :  { %v1517_v13 = vmul.f32 0.03125, %v1513_v1  ;;  %v1522_v14 = vmul.f32 %v1520_v12, %v1520_v12  ;;  %v1554_v49 = vmul.f32 %v1800_v47, %v1520_v12 }
 0xa59   :  { %v1519_v15 = vsub.f32 %v2354_v8, %v1517_v13  ;;  %v1526_v16 = vsel %vm45_vm0, %v1522_v14, 0.0 }
 0xa5a   :  { %1527 = vadd.xlane.f32.xlu1 %v1526_v16 }
 0xa5b   :  { %v1521_v17 = vmul.f32 %v1519_v15, %v1519_v15  ;;  %v1553_v50 = vmul.f32 %v1800_v47, %v1519_v15 }
 0xa5d   :  { %v1523_v0 = vsel %vm45_vm0, %v1521_v17, 0.0 }
 0xa5e   :  { %1524 = vadd.xlane.f32.xlu0 %v1523_v0 }
 0xae7   :  { %v1528_v32 = vpop.xlane.xlu1 %1527 }
 0xae8   :  { %v1530_v33 = vmul.f32 0.032258064, %v1528_v32 }
 0xaea   :  { %2057 = vrsqrt.f32 %v1530_v33  ;;  %vm1540_vm7 = vcmp.eq.f32.partialorder %v1530_v33, inf  ;;  %v1543_v38 = vand.u32 2147483648, %v1530_v33  ;;  %vm1542_vm8 = vcmp.eq.f32.partialorder %v1530_v33, 0.0 }
 0xaeb   :  { %v1525_v34 = vpop.xlane.xlu0 %1524 }
 0xaec   :  { %v1529_v35 = vmul.f32 0.032258064, %v1525_v34 }
 0xaee   :  { %2059 = vrsqrt.f32 %v1529_v35  ;;  %vm1533_vm9 = vcmp.eq.f32.partialorder %v1529_v35, inf  ;;  %v1536_v43 = vand.u32 2147483648, %v1529_v35  ;;  %vm1535_vm10 = vcmp.eq.f32.partialorder %v1529_v35, 0.0 }
 0xaf4   :  { %v2058_v36 = vpop.eup %2057 }
 0xaf5   :  { %v1539_v37 = vmul.f32 %v2058_v36, %v1530_v33 }
 0xaf7   :  { %v1541_v39 = vsel %vm1540_vm7, %v1530_v33, %v1539_v37 }
 0xaf8   :  { %v2060_v40 = vpop.eup %2059  ;;  %v1544_v41 = vsel %vm1542_vm8, %v1543_v38, %v1541_v39 }
 0xaf9   :  { %v1546_v42 = vadd.f32 1e-06, %v1544_v41  ;;  %v1532_v21 = vmul.f32 %v2060_v40, %v1529_v35 }
 0xafb   :  { %v1534_v44 = vsel %vm1533_vm9, %v1529_v35, %v1532_v21  ;;  %2061 = vrcp.f32 %v1546_v42 }
 0xafc   :  { %v1537_v45 = vsel %vm1535_vm10, %v1536_v43, %v1534_v44 }
 0xafd   :  { %v1545_v46 = vadd.f32 1e-06, %v1537_v45 }
 0xaff   :  { %2063 = vrcp.f32 %v1545_v46 }
 0xb05   :  { %v2062_v48 = vpop.eup %2061 }
 0xb06   :  { %v1556_v52 = vmul.f32 %v2062_v48, %v1554_v49 }
 0xb08   :  { %v1562_v59 = vadd.f32 %v1801_v56, %v1556_v52 }
 0xb09   :  { %v2064_v51 = vpop.eup %2063 }
 0xb0a   :  { %v1555_v57 = vmul.f32 %v2064_v51, %v1553_v50 }
 0xb0c   :  { %v1561_v58 = vadd.f32 %v1801_v56, %v1555_v57 }
 0xb0e   :  { %1944 = vmatprep.mubr.msk.f32.mxu1 %vm45_vm0, %v1561_v58 }
 0xb0f   :  { %1945 = vmatmul.mubr.msk.f32.vlgmr.msra.gmra.mrb[20].mxu1 %vm45_vm0, %v1562_v59 }
 0xbe2   :  { %v1946_v2 = vpop.f32.mrb[20].mxu1 }
 0xbe3   :  { %v1652_v3 = vadd.f32 %v1946_v2, %v1802_v63  ;;  %v1646_v54 = vpop.f32.mrb[21].mxu1 }
 0xbe4   :  { %v1647_v5 = vadd.f32 %v1802_v63, %v1646_v54 }
 0xbe5   :  { %v1656_v7 = vmax.f32 %v1652_v3, 0.0 }
 0xbe6   :  { %v1655_v6 = vmax.f32 %v1647_v5, 0.0 }
 0xbe8   :  { %1963 = vmatprep.mubr.msk.f32.mxu0 %vm1669_vm11, %v1655_v6 }
 0xbe9   :  { %1964 = vmatmul.mubr.msk.f32.vlgmr.msra.gmra.mrb[16].mxu0 %vm1669_vm11, %v1656_v7 }
 0xcbc   :  { %v1965_v10 = vpop.f32.mrb[16].mxu0 }
 0xcbd   :  { %v1748_v11 = vadd.f32 %v1965_v10, %v1805_v9  ;;  %v1742_v12 = vpop.f32.mrb[17].mxu0 }
 0xcbe   :  { %v1743_v1 = vadd.f32 %v1805_v9, %v1742_v12 }
 0xcbf   :  { %v1752_v13 = vadd.f32 %v1748_v11, %v2349_v4 }
 0xcc0   :  { %v1751_v14 = vadd.f32 %v1743_v1, %v2354_v8 }
 0xcc1   :  { %1754 = vst.msk [vmem:[#allocation5 + $0x8] sm:$0xff] %vm45_vm0, %v1752_v13 }
 0xcc2   :  { %1753 = vst.msk [vmem:[#allocation5] sm:$0xff] %vm45_vm0, %v1751_v14 }
 0xcc3   :  { %2098 = shalt.err (!%p2095_p12)
}
 0xcc4   :  { %s2099_s24 = scalar_lea.hbm %s2437_s6, 256 }
 0xcc5   :  { %p2100_p13 = scmp.ne.s32.totalorder %s2437_s6, %s2099_s24  ;;  %p2103_p0 = scmp.lt.u32.totalorder %s2099_s24, %s2437_s6 }
 0xcc7   :  { %p2105_p1 = pnand %p2103_p0, %p2100_p13 }
 0xcc9   :  { %2108 = shalt.err (!%p2105_p1)
}
 0xcca   :  { %1766 = dma.vmem_to_hbm [thread:$0]  %s1761_s22, 256, %s2437_s6, [#allocation4], %s2114_s7, %s2114_s7, %s2115_s8  }
 0xccb   :  { %2111 = dma.done.wait [#allocation4], 256  }
 0xccc   :  { %2112 = vsyncadd [#allocation4], 4294967040 }
 0xccd   :  { %1770 = vsyncpa [#allocation3], 1 }
 0xcce   :  { %1771 = vsyncpa [#allocation4], 1 }

</bundles_post_ra>
